<compile_context>
chip_gen: v5e
topology: v5e:2x2
jax: 0.10.0
libtpu: 0.0.40
codegen_flags: <defaults>
</compile_context>

<pallas_src>
import functools

import jax
import jax.numpy as jnp
from jax.experimental import pallas as pl
from jax.experimental.pallas import tpu as pltpu


def _round_up(v, m):
    return ((v + m - 1) // m) * m


def _deg_weights_kernel(x_ref, kmat_ref, o_ref, *, half_area, n_splits):
    # x_ref    : (TN, HW)        flattened images for this batch tile (caller dtype)
    # kmat_ref : (HW, HoWo_pad)  fused 0/1 pooling matrix, bf16 (exact), lane-padded
    # o_ref    : (1, 1, TN)      degW for this batch tile (lane-dense row)
    k_bf = kmat_ref[...]                                   # (HW, HoWo_pad) bf16 0/1
    x = x_ref[...].astype(jnp.float32)                     # (TN, HW)

    # Exact f32 window sums from native 1-pass bf16 MXU matmuls: split x into
    # n_splits bf16 components (3 x 8 mantissa bits cover f32's 24 bits, so the
    # split reconstructs x exactly; 1 component suffices for bf16 inputs).  Each
    # component's products with the 0/1 kmat are exact; accumulation stays f32.
    win_sum = None
    rem = x
    for i in range(n_splits):
        part = rem.astype(jnp.bfloat16)
        term = jnp.dot(part, k_bf, preferred_element_type=jnp.float32)
        win_sum = term if win_sum is None else win_sum + term
        if i + 1 < n_splits:
            rem = rem - part.astype(jnp.float32)

    # avg_pool == 0.5  <=>  window_sum == 0.5*k*k  (padded zero columns give a sum
    # of 0 and half_area >= 0.5, so they never match).
    hits = jnp.where(win_sum == half_area, 1.0, 0.0)       # (TN, HoWo_pad) f32

    # Epilogue: fold lane groups with cheap VPU adds so at most a (TN, 128) tile
    # goes through the XLU transpose, then sublane-reduce to a lane-dense (1, TN)
    # row (batch on lanes -> dense exp2 + unmasked stores).
    folded = hits[:, 0:128]
    for g in range(1, hits.shape[-1] // 128):
        folded = folded + hits[:, g * 128:(g + 1) * 128]
    count = jnp.sum(folded.T, axis=0, keepdims=True)       # (1, TN)
    o_ref[0] = jnp.exp2(-count)                            # 2.0 ** -count, float32


def deg_weights(x, kernel_size, stride=None, padding=0):
    """Pallas implementation of DegWeights.forward. Returns (N, 1, 1, 1) float32."""
    if x.ndim != 4:
        raise ValueError(
            "Expected 4D input tensor (batch_size, channels, height, width), "
            "got {}D tensor instead".format(x.ndim))
    N, C, H, W = x.shape
    if C != 1:
        # torch's .view(N, 1) on the (N, C) count only works when C == 1
        raise ValueError("DegWeights requires a single input channel (C == 1)")

    k = int(kernel_size)
    s = k if stride is None else int(stride)
    p = int(padding)
    Ho = (H + 2 * p - k) // s + 1
    Wo = (W + 2 * p - k) // s + 1
    if Ho <= 0 or Wo <= 0:
        raise ValueError("pooling window does not fit the (padded) input")

    # 0/1 pooling matrices over the UNPADDED index range (padding folded in:
    # padded zeros add nothing to window sums; count_include_pad=True only fixes
    # the divisor at k*k, which is folded into half_area).
    h_idx = jnp.arange(H)[None, :]
    ho_start = (jnp.arange(Ho) * s - p)[:, None]
    ph = (h_idx >= ho_start) & (h_idx < ho_start + k)            # (Ho, H) bool
    w_idx = jnp.arange(W)[:, None]
    wo_start = (jnp.arange(Wo) * s - p)[None, :]
    pw = (w_idx >= wo_start) & (w_idx < wo_start + k)            # (W, Wo) bool

    # Fused pooling matrix kmat[(h,w),(ho,wo)] = ph[ho,h]*pw[w,wo], stored as bf16
    # (0/1 is exact) -> single native MXU pass and half the VMEM/HBM footprint.
    # TODO(synk): for large images switch to the separable two-matmul path
    # ((TN*H,W)@(W,Wo) then contract H with PH) and single-buffer the constant kmat
    # block (pipeline_mode=pl.Buffered(1)); the fused matrix grows as O(H*W*Ho*Wo)
    # and would stress v7x's 64 MiB VMEM around 64x64 inputs.
    kmat = (ph.T[:, None, :, None] & pw[None, :, None, :]).reshape(H * W, Ho * Wo)
    kmat = kmat.astype(jnp.bfloat16)

    HW = H * W
    HoWo = Ho * Wo
    # Lane-pad the output-pixel axis to a multiple of 128 so the matmul result and
    # the compare/fold are lane-dense (zero columns never match the threshold).
    HoWo_pad = _round_up(HoWo, 128)
    if HoWo_pad != HoWo:
        kmat = jnp.pad(kmat, ((0, 0), (0, HoWo_pad - HoWo)))

    # Keep the caller's dtype (no wrapper-side upcast / extra HBM copy); the kernel
    # widens in VMEM.  bf16 input needs 1 MXU pass, f32 needs 3.
    if x.dtype == jnp.bfloat16:
        n_splits = 1
    elif x.dtype == jnp.float32:
        n_splits = 3
    else:
        x = x.astype(jnp.float32)
        n_splits = 3
    x_flat = x.reshape(N, HW)                       # free reshape (C == 1)
    itemsize = x_flat.dtype.itemsize

    gran = {4: 8, 2: 16, 1: 32}.get(itemsize, 8)    # sublane packing granule
    N_pad = _round_up(N, gran)
    if N_pad != N:
        # Cheap row pad (only when N isn't sublane-aligned) keeps every batch tile
        # (8/16,128)-aligned; padded rows produce degW=1 and are dropped below.
        x_flat = jnp.pad(x_flat, ((0, N_pad - N), (0, 0)))

    # Batch tile: target ~8 MiB x-blocks to amortize the ~0.35us/step overhead,
    # but force >=2 blocks when there is enough work so the "parallel" axis can
    # shard across both v7x TensorCores.
    bytes_per_img = HW * itemsize
    cap = max(gran, min(4096, ((8 << 20) // bytes_per_img) // gran * gran))
    min_blocks = 2 if N_pad >= 4 * gran else 1
    tn = min(cap, max(gran, _round_up(pl.cdiv(N_pad, min_blocks), gran)))
    num_blocks = pl.cdiv(N_pad, tn)
    # NOTE: rows of a partial last block beyond N_pad hold unspecified data; their
    # per-image results land in lanes >= N and are dropped by the [:N] slice below.

    # Scoped-VMEM budget derived from the actual buffers: 2x double-buffered x block
    # + 2x kmat (constant block index, fetched once) + matmul/compare/transpose
    # intermediates, plus headroom; clamped to v7x's 64 MiB per-TC VMEM.
    x_block_bytes = tn * HW * itemsize
    kmat_bytes = HW * HoWo_pad * 2
    inter_bytes = tn * HoWo_pad * 4
    vmem_limit = 2 * x_block_bytes + 2 * kmat_bytes + 4 * inter_bytes + (2 << 20)
    vmem_limit = int(min(max(vmem_limit, 8 << 20), 64 << 20))

    kernel = functools.partial(
        _deg_weights_kernel, half_area=0.5 * float(k * k), n_splits=n_splits)

    out = pl.pallas_call(
        kernel,
        out_shape=jax.ShapeDtypeStruct((num_blocks, 1, tn), jnp.float32),
        grid=(num_blocks,),
        in_specs=[
            pl.BlockSpec((tn, HW), lambda g: (g, 0)),
            pl.BlockSpec((HW, HoWo_pad), lambda g: (0, 0)),
        ],
        out_specs=pl.BlockSpec((1, 1, tn), lambda g: (g, 0, 0)),
        compiler_params=pltpu.CompilerParams(
            dimension_semantics=("parallel",),
            vmem_limit_bytes=vmem_limit),
    )(x_flat, kmat)

    # lane-dense (num_blocks, 1, tn) -> (N, 1, 1, 1)
    return out.reshape(num_blocks * tn)[:N].reshape(N, 1, 1, 1)


def _reference(x, kernel_size, stride=None, padding=0):
    """Pure-JAX reference mirroring the PyTorch forward (general stride/padding)."""
    k = int(kernel_size)
    s = k if stride is None else int(stride)
    p = int(padding)
    sums = jax.lax.reduce_window(
        x, 0.0, jax.lax.add,
        window_dimensions=(1, 1, k, k),
        window_strides=(1, 1, s, s),
        padding=((0, 0), (0, 0), (p, p), (p, p)))
    x_down = sums / float(k * k)                    # count_include_pad=True
    count = (x_down == 0.5).sum(axis=(-2, -1)).reshape(x.shape[0], 1)
    count = count.astype(jnp.float32)
    return (2.0 ** (-count)).astype(jnp.float32)[:, :, None, None]


if __name__ == "__main__":
    key = jax.random.PRNGKey(0)
    k1, k2, k3 = jax.random.split(key, 3)

    # Test 1: default config (stride == kernel_size, no padding), f32 binary input,
    # so some 2x2 windows average to exactly 0.5.
    N, C, H, W = 8, 1, 16, 16
    x1 = jax.random.bernoulli(k1, p=0.5, shape=(N, C, H, W)).astype(jnp.float32)
    out1 = jax.block_until_ready(deg_weights(x1, kernel_size=2))
    ref1 = _reference(x1, 2)
    assert out1.shape == (N, 1, 1, 1), out1.shape
    assert out1.dtype == jnp.float32, out1.dtype
    assert jnp.allclose(out1, ref1), (out1.ravel(), ref1.ravel())

    # Test 2: padded / strided config (k=3, stride=2, padding=1), values in
    # {0, 0.5, 1} so odd-sized windows can also average to exactly 0.5.
    x2 = jax.random.randint(k2, (N, C, H, W), 0, 3).astype(jnp.float32) * 0.5
    out2 = jax.block_until_ready(deg_weights(x2, kernel_size=3, stride=2, padding=1))
    ref2 = _reference(x2, 3, stride=2, padding=1)
    assert out2.shape == (N, 1, 1, 1), out2.shape
    assert out2.dtype == jnp.float32, out2.dtype
    assert jnp.allclose(out2, ref2), (out2.ravel(), ref2.ravel())

    # Test 3: bf16 input (single MXU pass path), larger batch exercising the
    # multi-block grid with a partial last tile (N=72 -> 2 blocks).
    N3 = 72
    x3 = (jax.random.randint(k3, (N3, C, H, W), 0, 3).astype(jnp.float32)
          * 0.5).astype(jnp.bfloat16)
    out3 = jax.block_until_ready(deg_weights(x3, kernel_size=2))
    ref3 = _reference(x3.astype(jnp.float32), 2)
    assert out3.shape == (N3, 1, 1, 1), out3.shape
    assert out3.dtype == jnp.float32, out3.dtype
    assert jnp.allclose(out3, ref3), (out3.ravel(), ref3.ravel())

    print("KERNEL_OK")
</pallas_src>

<mosaic_0001>
module attributes {stable_mosaic.version = 11 : i64} {
  func.func @_deg_weights_kernel(%arg0: i32, %arg1: memref<8x256xf32, #tpu.memory_space<vmem>>, %arg2: memref<256x128xbf16, #tpu.memory_space<vmem>>, %arg3: memref<1x1x8xf32, #tpu.memory_space<vmem>>) attributes {dimension_semantics = [#tpu.dimension_semantics<parallel>], iteration_bounds = array<i64: 1>, scalar_prefetch = 0 : i64, scratch_operands = 0 : i64, tpu.core_type = #tpu.core_type<tc>, window_params = [{transform_indices = @transform_0, window_bounds = array<i64: 8, 256>}, {pipeline_mode = #tpu.pipeline_mode<synchronous>, transform_indices = @transform_1, window_bounds = array<i64: 256, 128>}, {transform_indices = @transform_2, window_bounds = array<i64: 1, 1, 8>}]} {
    %c0 = arith.constant 0 : index
    %c0_0 = arith.constant 0 : index
    %0 = vector.load %arg2[%c0, %c0_0] : memref<256x128xbf16, #tpu.memory_space<vmem>>, vector<256x128xbf16>
    %c0_1 = arith.constant 0 : index
    %c0_2 = arith.constant 0 : index
    %1 = vector.load %arg1[%c0_1, %c0_2] : memref<8x256xf32, #tpu.memory_space<vmem>>, vector<8x256xf32>
    %2 = arith.truncf %1 : vector<8x256xf32> to vector<8x256xbf16>
    %cst = arith.constant dense<0.000000e+00> : vector<8x128xf32>
    %3 = tpu.matmul %2, %0, %cst {dimension_numbers = #tpu.dot_dimension_numbers<[1], [0], [0], [1], [0, 0, 1, 1], [], []>} : vector<8x256xbf16>, vector<256x128xbf16>, vector<8x128xf32> -> vector<8x128xf32>
    %4 = arith.extf %2 : vector<8x256xbf16> to vector<8x256xf32>
    %5 = arith.subf %1, %4 : vector<8x256xf32>
    %6 = arith.truncf %5 : vector<8x256xf32> to vector<8x256xbf16>
    %cst_3 = arith.constant dense<0.000000e+00> : vector<8x128xf32>
    %7 = tpu.matmul %6, %0, %cst_3 {dimension_numbers = #tpu.dot_dimension_numbers<[1], [0], [0], [1], [0, 0, 1, 1], [], []>} : vector<8x256xbf16>, vector<256x128xbf16>, vector<8x128xf32> -> vector<8x128xf32>
    %8 = arith.addf %3, %7 : vector<8x128xf32>
    %9 = arith.extf %6 : vector<8x256xbf16> to vector<8x256xf32>
    %10 = arith.subf %5, %9 : vector<8x256xf32>
    %11 = arith.truncf %10 : vector<8x256xf32> to vector<8x256xbf16>
    %cst_4 = arith.constant dense<0.000000e+00> : vector<8x128xf32>
    %12 = tpu.matmul %11, %0, %cst_4 {dimension_numbers = #tpu.dot_dimension_numbers<[1], [0], [0], [1], [0, 0, 1, 1], [], []>} : vector<8x256xbf16>, vector<256x128xbf16>, vector<8x128xf32> -> vector<8x128xf32>
    %13 = arith.addf %8, %12 : vector<8x128xf32>
    %cst_5 = arith.constant 2.000000e+00 : f32
    %14 = vector.broadcast %cst_5 : f32 to vector<8x128xf32>
    %15 = arith.cmpf oeq, %13, %14 : vector<8x128xf32>
    %cst_6 = arith.constant 1.000000e+00 : f32
    %cst_7 = arith.constant 0.000000e+00 : f32
    %16 = vector.broadcast %cst_6 : f32 to vector<8x128xf32>
    %17 = vector.broadcast %cst_7 : f32 to vector<8x128xf32>
    %18 = arith.select %15, %16, %17 : vector<8x128xi1>, vector<8x128xf32>
    %19 = tpu.transpose %18, [1, 0] : vector<8x128xf32> -> vector<128x8xf32>
    %cst_8 = arith.constant dense<0.000000e+00> : vector<8xf32>
    %20 = vector.multi_reduction <add>, %19, %cst_8 [0] : vector<128x8xf32> to vector<8xf32>
    %21 = vector.shape_cast %20 : vector<8xf32> to vector<1x8xf32>
    %cst_9 = arith.constant 0.000000e+00 : f32
    %22 = vector.broadcast %cst_9 : f32 to vector<1x8xf32>
    %23 = arith.subf %22, %21 : vector<1x8xf32>
    %24 = math.exp2 %23 : vector<1x8xf32>
    %c0_10 = arith.constant 0 : index
    %c0_11 = arith.constant 0 : index
    %c0_12 = arith.constant 0 : index
    %25 = vector.load %arg3[%c0_10, %c0_11, %c0_12] : memref<1x1x8xf32, #tpu.memory_space<vmem>>, vector<1x1x8xf32>
    %26 = vector.shape_cast %25 : vector<1x1x8xf32> to vector<1x8xf32>
    %27 = vector.shape_cast %24 : vector<1x8xf32> to vector<1x1x8xf32>
    tpu.vector_store %arg3[%c0_10, %c0_11, %c0_12], %27 {strides = array<i32>} : memref<1x1x8xf32, #tpu.memory_space<vmem>>, vector<1x1x8xf32>,
    return
  }
  func.func @transform_0(%arg0: i32) -> (i32, i32) {
    %c0_i32 = arith.constant 0 : i32
    %c0_i32_0 = arith.constant 0 : i32
    return %arg0, %c0_i32 : i32, i32
  }
  func.func @transform_1(%arg0: i32) -> (i32, i32) {
    %c0_i32 = arith.constant 0 : i32
    %c0_i32_0 = arith.constant 0 : i32
    %c0_i32_1 = arith.constant 0 : i32
    return %c0_i32, %c0_i32_0 : i32, i32
  }
  func.func @transform_2(%arg0: i32) -> (i32, i32, i32) {
    %c0_i32 = arith.constant 0 : i32
    %c0_i32_0 = arith.constant 0 : i32
    %c0_i32_1 = arith.constant 0 : i32
    return %arg0, %c0_i32, %c0_i32_0 : i32, i32, i32
  }
}

</mosaic_0001>

<bundles_post_ra>
// kernel: tpu_custom_call.1
= control target key start
LH: loop header
LB: loop body
LE: loop exit
PB: predicated region body
PF: predicated region fallthrough
CT: control target
= control target key end

     0   :  { %7 = vsyncpa [#allocation3], 0  ;;  %s598_s0 = inlined_call_operand.hbm [shape: f32[8,256], index: 0, kind: input, shape index: {}]   ;;  %s599_s1 = inlined_call_operand.hbm [shape: bf16[256,128], index: 1, kind: input, shape index: {}]   ;;  %s600_s2 = inlined_call_operand.hbm [shape: f32[1,1,8], index: 2, kind: output, shape index: {}]  }
   0x1   :  { %8 = vsyncpa [#allocation6], 0 }
   0x2   :  { %9 = vsyncpa [#allocation4], 0  ;;  %s15_s11 = sshll.u32 %s598_s0, 4  ;;  %s537_s12 = smov [#allocation2]   ;;  %s16_s11 = int_to_ptr.hbm [resolvable:$true] %s15_s11 }
   0x3   :  { %s17_s13 = sshll.u32 %s537_s12, 4  ;;  %s25_s16 = sshll.u32 %s599_s1, 4  ;;  %s18_s13 = int_to_ptr.vmem [resolvable:$true] %s17_s13  ;;  %s26_s16 = int_to_ptr.hbm [resolvable:$true] %s25_s16 }
   0x4   :  { %20 = dma.hbm_to_vmem [thread:$0]  %s16_s11, 256, %s18_s13, [#allocation3]  }
   0x5   :  { %s538_s17 = smov [#allocation5]   ;;  %s539_s19 = smov 64  }
   0x6   :  { %s27_s18 = sshll.u32 %s538_s17, 4  ;;  %s540_s20 = smov 4   ;;  %s28_s18 = int_to_ptr.vmem [resolvable:$true] %s27_s18 }
   0x7   :  { %33 = dma.hbm_to_vmem [thread:$0]  %s26_s16, 2048, %s28_s18, [#allocation6], %s539_s19, %s539_s19, %s540_s20  }
   0x8   :  { %531 = dma.done.wait [#allocation3], 256  }
   0x9   :  { %532 = vsyncadd [#allocation3], 4294967040 }
   0xa   :  { %533 = dma.done.wait [#allocation6], 2048  }
   0xb   :  { %534 = vsyncadd [#allocation6], 4294965248  ;;  %v442_v0 = vld [vmem:[#allocation5 + $0x38] sm:$0xff]  ;;  %v564_v2 = vld [vmem:[#allocation5 + $0x30] sm:$0xff]  ;;  %v541_v53 = vmov 0.0   ;;  %vm311_vm1 = vcmask 64512  }
   0xc   :  { %v450_v1 = vld [vmem:[#allocation5 + $0x78] sm:$0xff]  ;;  %185 = vmatpush.bf16.msra.mxu0 %v442_v0  ;;  %v566_v3 = vld [vmem:[#allocation5 + $0x70] sm:$0xff]  ;;  %218 = vmatpush.bf16.msra.mxu2 %v442_v0  ;;  %v568_v4 = vld [vmem:[#allocation5 + $0x28] sm:$0xff]  ;;  %s542_s0 = smov [#allocation7]   ;;  %s360_s23 = sshll.u32 %s600_s2, 4  ;;  %vm351_vm2 = vcmask 57344   ;;  %s361_s23 = int_to_ptr.hbm [resolvable:$true] %s360_s23 }
   0xd   :  { %198 = vmatpush.bf16.msra.mxu1 %v450_v1  ;;  %231 = vmatpush.bf16.msra.mxu3 %v450_v1  ;;  %v448_v5 = vld [vmem:[#allocation5 + $0x68] sm:$0xff]  ;;  %v74_v6 = vld [vmem:[#allocation2] sm:$0xff]  ;;  %v75_v7 = vld [vmem:[#allocation2 + $0x8] sm:$0xff]  ;;  %s358_s1 = sshll.u32 %s542_s0, 4  ;;  %s359_s1 = int_to_ptr.vmem [resolvable:$true] %s358_s1 }
   0xe   :  { %v76_v8 = vpack.c.bf16 %v75_v7, %v74_v6  ;;  %v439_v9 = vld [vmem:[#allocation5 + $0x20] sm:$0xff]  ;;  %v438_v13 = vld [vmem:[#allocation5 + $0x18] sm:$0xff]  ;;  %v437_v17 = vld [vmem:[#allocation5 + $0x10] sm:$0xff] }
   0xf   :  { %v447_v10 = vld [vmem:[#allocation5 + $0x60] sm:$0xff]  ;;  %v446_v14 = vld [vmem:[#allocation5 + $0x58] sm:$0xff]  ;;  %v445_v18 = vld [vmem:[#allocation5 + $0x50] sm:$0xff] }
  0x10   :  { %186 = vmatpush.bf16.msra.mxu0 %v564_v2  ;;  %219 = vmatpush.bf16.msra.mxu2 %v564_v2  ;;  %v77_v11 = vunpack.c.l.bf16 %v76_v8  ;;  %v78_v12 = vunpack.c.h.bf16 %v76_v8  ;;  %v436_v20 = vld [vmem:[#allocation5 + $0x8] sm:$0xff]  ;;  %v435_v24 = vld [vmem:[#allocation5] sm:$0xff]  ;;  %v212_v26 = vunpack.c.l.b16 %v76_v8  ;;  %v213_v27 = vunpack.c.h.b16 %v76_v8 }
  0x11   :  { %199 = vmatpush.bf16.msra.mxu1 %v566_v3  ;;  %232 = vmatpush.bf16.msra.mxu3 %v566_v3  ;;  %v444_v21 = vld [vmem:[#allocation5 + $0x48] sm:$0xff]  ;;  %v443_v25 = vld [vmem:[#allocation5 + $0x40] sm:$0xff] }
  0x12   :  { %v79_v15 = vsub.f32 %v74_v6, %v77_v11  ;;  %v80_v16 = vsub.f32 %v75_v7, %v78_v12  ;;  %v214_v30 = vpack.c.b16 %v212_v26, %v212_v26  ;;  %v215_v31 = vpack.c.b16 %v213_v27, %v213_v27 }
  0x14   :  { %187 = vmatpush.bf16.msra.mxu0 %v568_v4  ;;  %220 = vmatpush.bf16.msra.mxu2 %v568_v4  ;;  %v81_v19 = vpack.c.bf16 %v80_v16, %v79_v15 }
  0x15   :  { %200 = vmatpush.bf16.msra.mxu1 %v448_v5  ;;  %233 = vmatpush.bf16.msra.mxu3 %v448_v5 }
  0x16   :  { %v83_v22 = vunpack.c.l.b16 %v81_v19  ;;  %v84_v23 = vunpack.c.h.b16 %v81_v19  ;;  %v244_v32 = vunpack.c.l.bf16 %v81_v19  ;;  %v245_v33 = vunpack.c.h.bf16 %v81_v19 }
  0x18   :  { %188 = vmatpush.bf16.msra.mxu0 %v439_v9  ;;  %221 = vmatpush.bf16.msra.mxu2 %v439_v9  ;;  %v85_v28 = vpack.c.b16 %v83_v22, %v83_v22  ;;  %v86_v29 = vpack.c.b16 %v84_v23, %v84_v23  ;;  %v246_v34 = vsub.f32 %v79_v15, %v244_v32 }
  0x19   :  { %201 = vmatpush.bf16.msra.mxu1 %v447_v10  ;;  %234 = vmatpush.bf16.msra.mxu3 %v447_v10  ;;  %v247_v35 = vsub.f32 %v80_v16, %v245_v33 }
  0x1a   :  { %v248_v36 = vpack.c.bf16 %v246_v34, %v246_v34 }
  0x1b   :  { %v249_v37 = vpack.c.bf16 %v247_v35, %v247_v35 }
  0x1c   :  { %189 = vmatpush.bf16.msra.mxu0 %v438_v13  ;;  %222 = vmatpush.bf16.msra.mxu2 %v438_v13 }
  0x1d   :  { %202 = vmatpush.bf16.msra.mxu1 %v446_v14  ;;  %235 = vmatpush.bf16.msra.mxu3 %v446_v14 }
  0x20   :  { %190 = vmatpush.bf16.msra.mxu0 %v437_v17  ;;  %223 = vmatpush.bf16.msra.mxu2 %v437_v17 }
  0x21   :  { %203 = vmatpush.bf16.msra.mxu1 %v445_v18  ;;  %236 = vmatpush.bf16.msra.mxu3 %v445_v18 }
  0x24   :  { %191 = vmatpush.bf16.msra.mxu0 %v436_v20  ;;  %224 = vmatpush.bf16.msra.mxu2 %v436_v20 }
  0x25   :  { %204 = vmatpush.bf16.msra.mxu1 %v444_v21  ;;  %237 = vmatpush.bf16.msra.mxu3 %v444_v21 }
  0x28   :  { %192 = vmatpush.bf16.msra.mxu0 %v435_v24  ;;  %225 = vmatpush.bf16.msra.mxu2 %v435_v24 }
  0x29   :  { %205 = vmatpush.bf16.msra.mxu1 %v443_v25  ;;  %238 = vmatpush.bf16.msra.mxu3 %v443_v25 }
  0x2b   :  { %193 = vmatmul.bf16.vlgmr.msra.gmra.mxu0 %v85_v28  ;;  %226 = vmatmul.bf16.vlgmr.msra.gmra.mxu2 %v214_v30 }
  0x2c   :  { %250 = vmatpush.bf16.msrb.mxu0 %v442_v0  ;;  %206 = vmatmul.bf16.vlgmr.msra.gmra.mxu1 %v86_v29 }
  0x2d   :  { %263 = vmatpush.bf16.msrb.mxu1 %v450_v1  ;;  %239 = vmatmul.bf16.vlgmr.msra.gmra.mxu3 %v215_v31 }
  0x30   :  { %251 = vmatpush.bf16.msrb.mxu0 %v564_v2 }
  0x31   :  { %264 = vmatpush.bf16.msrb.mxu1 %v566_v3 }
  0x34   :  { %252 = vmatpush.bf16.msrb.mxu0 %v568_v4 }
  0x35   :  { %265 = vmatpush.bf16.msrb.mxu1 %v448_v5 }
  0x38   :  { %253 = vmatpush.bf16.msrb.mxu0 %v439_v9 }
  0x39   :  { %266 = vmatpush.bf16.msrb.mxu1 %v447_v10 }
  0x3c   :  { %254 = vmatpush.bf16.msrb.mxu0 %v438_v13 }
  0x3d   :  { %267 = vmatpush.bf16.msrb.mxu1 %v446_v14 }
  0x40   :  { %255 = vmatpush.bf16.msrb.mxu0 %v437_v17 }
  0x41   :  { %268 = vmatpush.bf16.msrb.mxu1 %v445_v18 }
  0x44   :  { %256 = vmatpush.bf16.msrb.mxu0 %v436_v20 }
  0x45   :  { %269 = vmatpush.bf16.msrb.mxu1 %v444_v21 }
  0x48   :  { %257 = vmatpush.bf16.msrb.mxu0 %v435_v24 }
  0x49   :  { %270 = vmatpush.bf16.msrb.mxu1 %v443_v25 }
  0x4b   :  { %258 = vmatmul.bf16.vlgmr.msrb.gmra.mxu0 %v248_v36 }
  0x4c   :  { %271 = vmatmul.bf16.vlgmr.msrb.gmra.mxu1 %v249_v37 }
  0xa8   :  { %v194_v38 = vpop.f32.mrf.mxu0 }
  0xa9   :  { %v207_v39 = vpop.f32.mrf.mxu1 }
  0xaa   :  { %v208_v46 = vadd.f32 %v207_v39, %v194_v38 }
  0xae   :  { %v227_v42 = vpop.f32.mrf.mxu2 }
  0xaf   :  { %v228_v47 = vadd.f32 %v227_v42, %v208_v46 }
  0xb0   :  { %v196_v40 = vpop.f32.mrf.mxu0  ;;  %v240_v43 = vpop.f32.mrf.mxu3 }
  0xb1   :  { %v209_v41 = vpop.f32.mrf.mxu1  ;;  %v241_v50 = vadd.f32 %v240_v43, %v228_v47 }
  0xb6   :  { %v229_v44 = vpop.f32.mrf.mxu2 }
  0xb8   :  { %v242_v45 = vpop.f32.mrf.mxu3 }
  0xc8   :  { %v259_v48 = vpop.f32.mrf.mxu0 }
  0xc9   :  { %v272_v49 = vpop.f32.mrf.mxu1 }
  0xca   :  { %v273_v51 = vadd.f32 %v272_v49, %v259_v48 }
  0xcc   :  { %v276_v52 = vadd.f32 %v273_v51, %v241_v50 }
  0xce   :  { %vm277_vm0 = vcmp.eq.f32.partialorder %v276_v52, 2.0 }
  0xcf   :  { %v278_v54 = vsel %vm277_vm0, 1.0, %v541_v53 }
  0xd0   :  { %279 = vxpose.xlu0.b32.start.end [1/1] (short) %v278_v54, 128  ;;  %v261_v55 = vpop.f32.mrf.mxu0 }
  0xd1   :  { %v274_v56 = vpop.f32.mrf.mxu1 }
 0x174   :  { %v295_v57 = vpop.trf.xlu0 }
 0x175   :  { %v312_v59 = vsel %vm311_vm1, %v295_v57, 0.0 }
 0x17c   :  { %v296_v58 = vpop.trf.xlu0 }
 0x17d   :  { %v313_v60 = vsel %vm311_vm1, %v296_v58, 0.0 }
 0x17e   :  { %v314_v61 = vadd.f32 %v313_v60, %v312_v59 }
 0x184   :  { %v297_v62 = vpop.trf.xlu0 }
 0x185   :  { %v315_v63 = vsel %vm311_vm1, %v297_v62, 0.0 }
 0x186   :  { %v316_v0 = vadd.f32 %v315_v63, %v314_v61 }
 0x18c   :  { %v298_v1 = vpop.trf.xlu0 }
 0x18d   :  { %v317_v2 = vsel %vm311_vm1, %v298_v1, 0.0 }
 0x18e   :  { %v318_v3 = vadd.f32 %v317_v2, %v316_v0 }
 0x194   :  { %v299_v4 = vpop.trf.xlu0 }
 0x195   :  { %v319_v5 = vsel %vm311_vm1, %v299_v4, 0.0 }
 0x196   :  { %v320_v6 = vadd.f32 %v319_v5, %v318_v3 }
 0x19c   :  { %v300_v7 = vpop.trf.xlu0 }
 0x19d   :  { %v321_v15 = vsel %vm311_vm1, %v300_v7, 0.0 }
 0x19e   :  { %v322_v17 = vadd.f32 %v321_v15, %v320_v6 }
 0x1a4   :  { %v301_v8 = vpop.trf.xlu0 }
 0x1a5   :  { %v323_v16 = vsel %vm311_vm1, %v301_v8, 0.0 }
 0x1a6   :  { %v324_v19 = vadd.f32 %v323_v16, %v322_v17 }
 0x1ac   :  { %v302_v9 = vpop.trf.xlu0 }
 0x1ad   :  { %v325_v18 = vsel %vm311_vm1, %v302_v9, 0.0 }
 0x1ae   :  { %v326_v22 = vadd.f32 %v325_v18, %v324_v19 }
 0x1b4   :  { %v303_v10 = vpop.trf.xlu0 }
 0x1b5   :  { %v327_v21 = vsel %vm311_vm1, %v303_v10, 0.0 }
 0x1b6   :  { %v328_v24 = vadd.f32 %v327_v21, %v326_v22 }
 0x1bc   :  { %v304_v11 = vpop.trf.xlu0 }
 0x1bd   :  { %v329_v23 = vsel %vm311_vm1, %v304_v11, 0.0 }
 0x1be   :  { %v330_v26 = vadd.f32 %v329_v23, %v328_v24 }
 0x1c4   :  { %v305_v12 = vpop.trf.xlu0 }
 0x1c5   :  { %v331_v25 = vsel %vm311_vm1, %v305_v12, 0.0 }
 0x1c6   :  { %v332_v28 = vadd.f32 %v331_v25, %v330_v26 }
 0x1cc   :  { %v306_v13 = vpop.trf.xlu0 }
 0x1cd   :  { %v333_v27 = vsel %vm311_vm1, %v306_v13, 0.0 }
 0x1ce   :  { %v334_v31 = vadd.f32 %v333_v27, %v332_v28 }
 0x1d4   :  { %v307_v14 = vpop.trf.xlu0 }
 0x1d5   :  { %v335_v30 = vsel %vm311_vm1, %v307_v14, 0.0 }
 0x1d6   :  { %v336_v33 = vadd.f32 %v335_v30, %v334_v31 }
 0x1dc   :  { %v308_v20 = vpop.trf.xlu0 }
 0x1dd   :  { %v337_v32 = vsel %vm311_vm1, %v308_v20, 0.0 }
 0x1de   :  { %v338_v35 = vadd.f32 %v337_v32, %v336_v33 }
 0x1e4   :  { %v309_v29 = vpop.trf.xlu0 }
 0x1e5   :  { %v339_v34 = vsel %vm311_vm1, %v309_v29, 0.0 }
 0x1e6   :  { %v340_v36 = vadd.f32 %v339_v34, %v338_v35 }
 0x1ec   :  { %v310_v37 = vpop.trf.xlu0 }
 0x1ed   :  { %v341_v38 = vsel %vm311_vm1, %v310_v37, 0.0 }
 0x1ee   :  { %v342_v39 = vadd.f32 %v341_v38, %v340_v36 }
 0x1f0   :  { %v343_v40 = vrot.slane %v342_v39, 4 }
 0x1f2   :  { %v344_v41 = vadd.f32 %v343_v40, %v342_v39 }
 0x1f4   :  { %v345_v42 = vrot.slane %v344_v41, 2 }
 0x1f6   :  { %v346_v43 = vadd.f32 %v345_v42, %v344_v41 }
 0x1f8   :  { %v347_v44 = vrot.slane %v346_v43, 1 }
 0x1fa   :  { %v348_v45 = vadd.f32 %v347_v44, %v346_v43 }
 0x1fc   :  { %v349_v46 = vsub.f32 0.0, %v348_v45 }
 0x1fe   :  { %457 = vpow2.f32 %v349_v46 }
 0x204   :  { %v458_v47 = vpop.eup %457 }
 0x205   :  { %352 = vst.msk [vmem:[#allocation7] sm:$0x1] %vm351_vm2, %v458_v47 }
 0x206   :  { %363 = dma.vmem_to_hbm [thread:$0]  %s359_s1, 16, %s361_s23, [#allocation4]  }
 0x207   :  { %535 = dma.done.wait [#allocation4], 16  }
 0x208   :  { %536 = vsyncadd [#allocation4], 4294967280 }
 0x209   :  { %368 = vsyncpa [#allocation3], 1 }
 0x20a   :  { %369 = vsyncpa [#allocation6], 1 }
 0x20b   :  { %370 = vsyncpa [#allocation4], 1 }

</bundles_post_ra>
